<compile_context>
chip_gen: v5e
topology: v5e:2x2
jax: 0.10.0
libtpu: 0.0.40
codegen_flags: <defaults>
</compile_context>

<pallas_src>
import jax
import jax.numpy as jnp
from jax.experimental import pallas as pl
from jax.experimental.pallas import tpu as pltpu


def critic_kernel(s_ref, a_ref, w1s_ref, w1a_ref, b1_ref,
                  w2_ref, b2_ref, w3_ref, b3_ref, o_ref):
    # Feature-major tiles (batch on the lane axis):
    #   s_ref: (S, TB) f32     a_ref: (A, TB) f32
    #   w1s:   (H, S)  f32     w1a:   (H, A)  f32     b1: (H, 1) f32
    #   w2:    (H, H)  f32     b2:    (H, 1)  f32
    #   w3:    (1, H)  f32     b3:    (1,)    f32 in SMEM
    #   o_ref: (1, TB) f32  (lane-dense row of Q-values)
    # fc1 over the (virtually) concatenated [state, action] input, fused.
    h1 = (jnp.dot(w1s_ref[...], s_ref[...], preferred_element_type=jnp.float32)
          + jnp.dot(w1a_ref[...], a_ref[...], preferred_element_type=jnp.float32)
          + b1_ref[...])
    h1 = jnp.maximum(h1, 0.0)

    h2 = jnp.dot(w2_ref[...], h1, preferred_element_type=jnp.float32) + b2_ref[...]
    h2 = jnp.maximum(h2, 0.0)

    q = jnp.dot(w3_ref[...], h2, preferred_element_type=jnp.float32) + b3_ref[0]
    o_ref[...] = q.astype(o_ref.dtype)


def _round_up(x, m):
    return ((x + m - 1) // m) * m


def critic_forward(state, action, kernel_params, *, block_b=2048):
    """state: (B, S), action: (B, A) -> Q-values (B, 1)."""
    w1s, w1a, b1, w2, b2, w3, b3 = kernel_params
    B, S = state.shape
    A = action.shape[1]

    # Batch tile (lane axis): single full tile for tiny batches, otherwise a
    # multiple of 128 with at least two grid steps so the "parallel" batch
    # axis can shard across both TensorCores on v7x.
    if B <= 128:
        tb = B
        b_pad = B
    else:
        tb = min(block_b, _round_up(pl.cdiv(B, 2), 128))
        b_pad = _round_up(B, tb)
    grid = (b_pad // tb,)

    # Feature-major inputs (tiny one-off transpose / zero-pad in the wrapper).
    state_t = state.T
    action_t = action.T
    if b_pad != B:
        state_t = jnp.pad(state_t, ((0, 0), (0, b_pad - B)))
        action_t = jnp.pad(action_t, ((0, 0), (0, b_pad - B)))

    def resident(arr):
        # Same block every grid step -> Pallas keeps it resident in VMEM.
        return pl.BlockSpec(arr.shape, lambda i: (0,) * arr.ndim)

    q_row = pl.pallas_call(
        critic_kernel,
        out_shape=jax.ShapeDtypeStruct((1, b_pad), jnp.float32),
        grid=grid,
        in_specs=[
            pl.BlockSpec((S, tb), lambda i: (0, i)),   # state^T  (batch on lanes)
            pl.BlockSpec((A, tb), lambda i: (0, i)),   # action^T (batch on lanes)
            resident(w1s), resident(w1a), resident(b1),
            resident(w2), resident(b2), resident(w3),
            # Scalar fc3 bias lives in SMEM as a 1-D ref (no 2-D SMEM padding).
            pl.BlockSpec(memory_space=pltpu.MemorySpace.SMEM),
        ],
        out_specs=pl.BlockSpec((1, tb), lambda i: (0, i)),
        compiler_params=pltpu.CompilerParams(
            dimension_semantics=("parallel",)),
    )(state_t, action_t, w1s, w1a, b1, w2, b2, w3, b3)

    # Lane-dense slab -> (B, 1) column (layout plumbing only).
    return q_row[0, :B].reshape(B, 1)


def init_critic_params(key, state_size, action_size, hidden_size=32):
    """Deterministic f32 init mirroring Critic.reset_parameters / nn.Linear.

    Weights are kept in PyTorch layout (out_features, in_features).
    PyTorch's hidden_init uses weight.size()[0] == out_features as "fan_in";
    we reproduce that exact behavior for the weight ranges and use nn.Linear's
    default U(-1/sqrt(in_features), 1/sqrt(in_features)) for biases
    (reset_parameters does not touch the biases).
    """
    in1 = state_size + action_size
    ks = jax.random.split(key, 6)

    lim1 = 1.0 / jnp.sqrt(jnp.float32(hidden_size))
    lim2 = 1.0 / jnp.sqrt(jnp.float32(hidden_size))
    lim3 = 0.003

    w1 = jax.random.uniform(ks[0], (hidden_size, in1), jnp.float32, -lim1, lim1)
    w2 = jax.random.uniform(ks[1], (hidden_size, hidden_size), jnp.float32, -lim2, lim2)
    w3 = jax.random.uniform(ks[2], (1, hidden_size), jnp.float32, -lim3, lim3)

    bl1 = 1.0 / jnp.sqrt(jnp.float32(in1))
    bl2 = 1.0 / jnp.sqrt(jnp.float32(hidden_size))
    bl3 = 1.0 / jnp.sqrt(jnp.float32(hidden_size))
    b1 = jax.random.uniform(ks[3], (hidden_size,), jnp.float32, -bl1, bl1)
    b2 = jax.random.uniform(ks[4], (hidden_size,), jnp.float32, -bl2, bl2)
    b3 = jax.random.uniform(ks[5], (1,), jnp.float32, -bl3, bl3)

    return (w1, b1, w2, b2, w3, b3)


def prepare_kernel_params(params_f32, state_size):
    """Split fc1's weight into state/action halves; biases -> (H, 1) columns."""
    w1, b1, w2, b2, w3, b3 = params_f32
    w1s = w1[:, :state_size]
    w1a = w1[:, state_size:]
    return (w1s, w1a, b1.reshape(-1, 1), w2, b2.reshape(-1, 1), w3, b3)


def critic_reference(state, action, params_f32):
    """Pure-JAX f32 reference with PyTorch Linear semantics."""
    w1, b1, w2, b2, w3, b3 = params_f32
    x = jnp.concatenate([state, action], axis=1)
    h = jnp.maximum(x @ w1.T + b1, 0.0)
    h = jnp.maximum(h @ w2.T + b2, 0.0)
    return h @ w3.T + b3


if __name__ == "__main__":
    key = jax.random.PRNGKey(0)
    k_param, k_s1, k_a1, k_s2, k_a2, k_s3, k_a3 = jax.random.split(key, 7)

    state_size = 8
    action_size = 4
    hidden_size = 32

    params_f32 = init_critic_params(k_param, state_size, action_size, hidden_size)
    kparams = prepare_kernel_params(params_f32, state_size)

    # Small inference-style batch (single full-array tile, grid=(1,)).
    batch = 2
    state = jax.random.normal(k_s1, (batch, state_size), jnp.float32)
    action = jax.random.normal(k_a1, (batch, action_size), jnp.float32)
    q = critic_forward(state, action, kparams)
    jax.block_until_ready(q)
    assert q.shape == (batch, 1)
    ref = critic_reference(state, action, params_f32)
    assert jnp.allclose(q, ref, atol=1e-3, rtol=1e-3)

    # Training-style batch exercising the multi-step (parallel) batch grid.
    big_b = 2048
    state_b = jax.random.normal(k_s2, (big_b, state_size), jnp.float32)
    action_b = jax.random.normal(k_a2, (big_b, action_size), jnp.float32)
    q_b = critic_forward(state_b, action_b, kparams)
    jax.block_until_ready(q_b)
    assert q_b.shape == (big_b, 1)
    ref_b = critic_reference(state_b, action_b, params_f32)
    assert jnp.allclose(q_b, ref_b, atol=1e-3, rtol=1e-3)

    # Ragged batch exercising zero-padding of the final batch tile.
    rag_b = 999
    state_r = jax.random.normal(k_s3, (rag_b, state_size), jnp.float32)
    action_r = jax.random.normal(k_a3, (rag_b, action_size), jnp.float32)
    q_r = critic_forward(state_r, action_r, kparams)
    jax.block_until_ready(q_r)
    assert q_r.shape == (rag_b, 1)
    ref_r = critic_reference(state_r, action_r, params_f32)
    assert jnp.allclose(q_r, ref_r, atol=1e-3, rtol=1e-3)

    print("KERNEL_OK")
</pallas_src>

<mosaic_0001>
module attributes {stable_mosaic.version = 11 : i64} {
  func.func @critic_kernel(%arg0: i32, %arg1: memref<8x2xf32, #tpu.memory_space<vmem>>, %arg2: memref<4x2xf32, #tpu.memory_space<vmem>>, %arg3: memref<32x8xf32, #tpu.memory_space<vmem>>, %arg4: memref<32x4xf32, #tpu.memory_space<vmem>>, %arg5: memref<32x1xf32, #tpu.memory_space<vmem>>, %arg6: memref<32x32xf32, #tpu.memory_space<vmem>>, %arg7: memref<32x1xf32, #tpu.memory_space<vmem>>, %arg8: memref<1x32xf32, #tpu.memory_space<vmem>>, %arg9: memref<1xf32, #tpu.memory_space<smem>>, %arg10: memref<1x2xf32, #tpu.memory_space<vmem>>) attributes {dimension_semantics = [#tpu.dimension_semantics<parallel>], iteration_bounds = array<i64: 1>, scalar_prefetch = 0 : i64, scratch_operands = 0 : i64, tpu.core_type = #tpu.core_type<tc>, window_params = [{transform_indices = @transform_0, window_bounds = array<i64: 8, 2>}, {transform_indices = @transform_1, window_bounds = array<i64: 4, 2>}, {pipeline_mode = #tpu.pipeline_mode<synchronous>, transform_indices = @transform_2, window_bounds = array<i64: 32, 8>}, {pipeline_mode = #tpu.pipeline_mode<synchronous>, transform_indices = @transform_3, window_bounds = array<i64: 32, 4>}, {pipeline_mode = #tpu.pipeline_mode<synchronous>, transform_indices = @transform_4, window_bounds = array<i64: 32, 1>}, {pipeline_mode = #tpu.pipeline_mode<synchronous>, transform_indices = @transform_5, window_bounds = array<i64: 32, 32>}, {pipeline_mode = #tpu.pipeline_mode<synchronous>, transform_indices = @transform_6, window_bounds = array<i64: 32, 1>}, {pipeline_mode = #tpu.pipeline_mode<synchronous>, transform_indices = @transform_7, window_bounds = array<i64: 1, 32>}, {transform_indices = @transform_8, window_bounds = array<i64: 1>}, {transform_indices = @transform_9, window_bounds = array<i64: 1, 2>}]} {
    %c0 = arith.constant 0 : index
    %c0_0 = arith.constant 0 : index
    %0 = vector.load %arg3[%c0, %c0_0] : memref<32x8xf32, #tpu.memory_space<vmem>>, vector<32x8xf32>
    %c0_1 = arith.constant 0 : index
    %c0_2 = arith.constant 0 : index
    %1 = vector.load %arg1[%c0_1, %c0_2] : memref<8x2xf32, #tpu.memory_space<vmem>>, vector<8x2xf32>
    %cst = arith.constant dense<0.000000e+00> : vector<32x2xf32>
    %2 = tpu.matmul %0, %1, %cst {dimension_numbers = #tpu.dot_dimension_numbers<[1], [0], [0], [1], [0, 0, 1, 1], [], []>} : vector<32x8xf32>, vector<8x2xf32>, vector<32x2xf32> -> vector<32x2xf32>
    %c0_3 = arith.constant 0 : index
    %c0_4 = arith.constant 0 : index
    %3 = vector.load %arg4[%c0_3, %c0_4] : memref<32x4xf32, #tpu.memory_space<vmem>>, vector<32x4xf32>
    %c0_5 = arith.constant 0 : index
    %c0_6 = arith.constant 0 : index
    %4 = vector.load %arg2[%c0_5, %c0_6] : memref<4x2xf32, #tpu.memory_space<vmem>>, vector<4x2xf32>
    %cst_7 = arith.constant dense<0.000000e+00> : vector<32x2xf32>
    %5 = tpu.matmul %3, %4, %cst_7 {dimension_numbers = #tpu.dot_dimension_numbers<[1], [0], [0], [1], [0, 0, 1, 1], [], []>} : vector<32x4xf32>, vector<4x2xf32>, vector<32x2xf32> -> vector<32x2xf32>
    %6 = arith.addf %2, %5 : vector<32x2xf32>
    %c0_8 = arith.constant 0 : index
    %c0_9 = arith.constant 0 : index
    %7 = vector.load %arg5[%c0_8, %c0_9] : memref<32x1xf32, #tpu.memory_space<vmem>>, vector<32x1xf32>
    %8 = vector.broadcast %7 : vector<32x1xf32> to vector<32x2xf32>
    %9 = arith.addf %6, %8 : vector<32x2xf32>
    %cst_10 = arith.constant 0.000000e+00 : f32
    %10 = vector.broadcast %cst_10 : f32 to vector<32x2xf32>
    %11 = arith.maximumf %9, %10 : vector<32x2xf32>
    %c0_11 = arith.constant 0 : index
    %c0_12 = arith.constant 0 : index
    %12 = vector.load %arg6[%c0_11, %c0_12] : memref<32x32xf32, #tpu.memory_space<vmem>>, vector<32x32xf32>
    %cst_13 = arith.constant dense<0.000000e+00> : vector<32x2xf32>
    %13 = tpu.matmul %12, %11, %cst_13 {dimension_numbers = #tpu.dot_dimension_numbers<[1], [0], [0], [1], [0, 0, 1, 1], [], []>} : vector<32x32xf32>, vector<32x2xf32>, vector<32x2xf32> -> vector<32x2xf32>
    %c0_14 = arith.constant 0 : index
    %c0_15 = arith.constant 0 : index
    %14 = vector.load %arg7[%c0_14, %c0_15] : memref<32x1xf32, #tpu.memory_space<vmem>>, vector<32x1xf32>
    %15 = vector.broadcast %14 : vector<32x1xf32> to vector<32x2xf32>
    %16 = arith.addf %13, %15 : vector<32x2xf32>
    %cst_16 = arith.constant 0.000000e+00 : f32
    %17 = vector.broadcast %cst_16 : f32 to vector<32x2xf32>
    %18 = arith.maximumf %16, %17 : vector<32x2xf32>
    %c0_17 = arith.constant 0 : index
    %c0_18 = arith.constant 0 : index
    %19 = vector.load %arg8[%c0_17, %c0_18] : memref<1x32xf32, #tpu.memory_space<vmem>>, vector<1x32xf32>
    %cst_19 = arith.constant dense<0.000000e+00> : vector<1x2xf32>
    %20 = tpu.matmul %19, %18, %cst_19 {dimension_numbers = #tpu.dot_dimension_numbers<[1], [0], [0], [1], [0, 0, 1, 1], [], []>} : vector<1x32xf32>, vector<32x2xf32>, vector<1x2xf32> -> vector<1x2xf32>
    %c0_20 = arith.constant 0 : index
    %21 = memref.load %arg9[%c0_20] : memref<1xf32, #tpu.memory_space<smem>>
    %22 = vector.broadcast %21 : f32 to vector<1x2xf32>
    %23 = arith.addf %20, %22 : vector<1x2xf32>
    %c0_21 = arith.constant 0 : index
    %c0_22 = arith.constant 0 : index
    %24 = vector.load %arg10[%c0_21, %c0_22] : memref<1x2xf32, #tpu.memory_space<vmem>>, vector<1x2xf32>
    tpu.vector_store %arg10[%c0_21, %c0_22], %23 {strides = array<i32>} : memref<1x2xf32, #tpu.memory_space<vmem>>, vector<1x2xf32>,
    return
  }
  func.func @transform_0(%arg0: i32) -> (i32, i32) {
    %c0_i32 = arith.constant 0 : i32
    %c0_i32_0 = arith.constant 0 : i32
    return %c0_i32, %arg0 : i32, i32
  }
  func.func @transform_1(%arg0: i32) -> (i32, i32) {
    %c0_i32 = arith.constant 0 : i32
    %c0_i32_0 = arith.constant 0 : i32
    return %c0_i32, %arg0 : i32, i32
  }
  func.func @transform_2(%arg0: i32) -> (i32, i32) {
    %c0_i32 = arith.constant 0 : i32
    %c0_i32_0 = arith.constant 0 : i32
    %c0_i32_1 = arith.constant 0 : i32
    return %c0_i32, %c0_i32_0 : i32, i32
  }
  func.func @transform_3(%arg0: i32) -> (i32, i32) {
    %c0_i32 = arith.constant 0 : i32
    %c0_i32_0 = arith.constant 0 : i32
    %c0_i32_1 = arith.constant 0 : i32
    return %c0_i32, %c0_i32_0 : i32, i32
  }
  func.func @transform_4(%arg0: i32) -> (i32, i32) {
    %c0_i32 = arith.constant 0 : i32
    %c0_i32_0 = arith.constant 0 : i32
    %c0_i32_1 = arith.constant 0 : i32
    return %c0_i32, %c0_i32_0 : i32, i32
  }
  func.func @transform_5(%arg0: i32) -> (i32, i32) {
    %c0_i32 = arith.constant 0 : i32
    %c0_i32_0 = arith.constant 0 : i32
    %c0_i32_1 = arith.constant 0 : i32
    return %c0_i32, %c0_i32_0 : i32, i32
  }
  func.func @transform_6(%arg0: i32) -> (i32, i32) {
    %c0_i32 = arith.constant 0 : i32
    %c0_i32_0 = arith.constant 0 : i32
    %c0_i32_1 = arith.constant 0 : i32
    return %c0_i32, %c0_i32_0 : i32, i32
  }
  func.func @transform_7(%arg0: i32) -> (i32, i32) {
    %c0_i32 = arith.constant 0 : i32
    %c0_i32_0 = arith.constant 0 : i32
    %c0_i32_1 = arith.constant 0 : i32
    return %c0_i32, %c0_i32_0 : i32, i32
  }
  func.func @transform_8(%arg0: i32) -> i32 {
    %c0_i32 = arith.constant 0 : i32
    %c0_i32_0 = arith.constant 0 : i32
    return %c0_i32 : i32
  }
  func.func @transform_9(%arg0: i32) -> (i32, i32) {
    %c0_i32 = arith.constant 0 : i32
    %c0_i32_0 = arith.constant 0 : i32
    return %c0_i32, %arg0 : i32, i32
  }
}

</mosaic_0001>

<bundles_post_ra>
// kernel: tpu_custom_call.1
= control target key start
LH: loop header
LB: loop body
LE: loop exit
PB: predicated region body
PF: predicated region fallthrough
CT: control target
= control target key end

     0   :  { %vm57_vm0 = vcmask 1043456   ;;  %vm44_vm1 = vcmask 31744   ;;  %vm90_vm2 = vcmask 64512   ;;  %v331_v6 = vmov 0   ;;  %s471_s0 = inlined_call_operand.vmem [shape: f32[8,2], index: 0, kind: input, shape index: {}]   ;;  %s472_s1 = inlined_call_operand.vmem [shape: f32[4,2], index: 1, kind: input, shape index: {}]   ;;  %s473_s2 = inlined_call_operand.vmem [shape: f32[32,8], index: 2, kind: input, shape index: {}]   ;;  %s474_s3 = inlined_call_operand.vmem [shape: f32[32,4], index: 3, kind: input, shape index: {}]   ;;  %s475_s4 = inlined_call_operand.vmem [shape: f32[32,1], index: 4, kind: input, shape index: {}]   ;;  %s476_s5 = inlined_call_operand.vmem [shape: f32[32,32], index: 5, kind: input, shape index: {}]   ;;  %s477_s6 = inlined_call_operand.vmem [shape: f32[32,1], index: 6, kind: input, shape index: {}]   ;;  %s478_s7 = inlined_call_operand.vmem [shape: f32[1,32], index: 7, kind: input, shape index: {}]   ;;  %s479_s8 = inlined_call_operand.<no memory space> [shape: f32[1], index: 8, kind: input, shape index: {}]   ;;  %s480_s9 = inlined_call_operand.hbm [shape: f32[1,2], index: 9, kind: output, shape index: {}]  }
   0x1   :  { %v43_v0 = vld [vmem:[%s472_s1] sm:$0xf]  ;;  %v133_v4 = vld [vmem:[%s475_s4 + $0x8] sm:$0xff]  ;;  %v135_v5 = vld [vmem:[%s475_s4 + $0x18] sm:$0xff]  ;;  %303 = vset.pattern.permute.xlu1 %v331_v6  ;;  %302 = vset.pattern.permute.xlu0 %v331_v6 }
   0x2   :  { %v38_v1 = vld [vmem:[%s471_s0] sm:$0xff]  ;;  %282 = vmatpush.msk.msra.mxu0 %vm57_vm0, %v43_v0  ;;  %143 = vperm.xlu1 %303, %v133_v4  }
   0x3   :  { %v39_v2 = vld [vmem:[%s474_s3] sm:$0xff]  ;;  %118 = vmatpush.msra.mxu1 %v38_v1  ;;  %153 = vperm.xlu0 %302, %v135_v5  }
   0x4   :  { %v34_v3 = vld [vmem:[%s473_s2] sm:$0xff]  ;;  %283 = vmatmul.msk.f32.vlgmr.msra.gmra.mxu0 %vm44_vm1, %v39_v2  ;;  %304 = vset.pattern.permute.xlu2 %v331_v6 }
   0x5   :  { %287 = vmatmul.msk.f32.vlgmr.msra.gmra.mxu1 %vm90_vm2, %v34_v3 }
   0x6   :  { %15 = vsyncpa [#allocation4], 0  ;;  %v40_v7 = vld [vmem:[%s474_s3 + $0x8] sm:$0xff]  ;;  %v132_v9 = vld [vmem:[%s475_s4] sm:$0xff]  ;;  %vm192_vm3 = vcmask 261120   ;;  %v240_v0 = vstv %s479_s8  ;;  %s332_s27 = smov [#allocation3]  }
   0x7   :  { %v35_v8 = vld [vmem:[%s473_s2 + $0x8] sm:$0xff]  ;;  %v134_v10 = vld [vmem:[%s475_s4 + $0x10] sm:$0xff]  ;;  %v168_v14 = vld [vmem:[%s477_s6] sm:$0xff]  ;;  %s271_s28 = sshll.u32 %s332_s27, 4  ;;  %s273_s10 = sshll.u32 %s480_s9, 4  ;;  %vm264_vm4 = vcmask 8192   ;;  %s272_s28 = int_to_ptr.vmem [resolvable:$true] %s271_s28  ;;  %s274_s10 = int_to_ptr.hbm [resolvable:$true] %s273_s10 }
   0x8   :  { %v41_v11 = vld [vmem:[%s474_s3 + $0x10] sm:$0xff]  ;;  %v169_v13 = vld [vmem:[%s477_s6 + $0x8] sm:$0xff]  ;;  %v42_v15 = vld [vmem:[%s474_s3 + $0x18] sm:$0xff] }
   0x9   :  { %v36_v12 = vld [vmem:[%s473_s2 + $0x10] sm:$0xff]  ;;  %v37_v16 = vld [vmem:[%s473_s2 + $0x18] sm:$0xff]  ;;  %v164_v43 = vld [vmem:[%s476_s5] sm:$0xff] }
   0xa   :  { %138 = vperm.xlu1 %303, %v132_v9   ;;  %v171_v25 = vld [vmem:[%s477_s6 + $0x18] sm:$0xff]  ;;  %v170_v38 = vld [vmem:[%s477_s6 + $0x10] sm:$0xff]  ;;  %v165_v45 = vld [vmem:[%s476_s5 + $0x8] sm:$0xff] }
   0xb   :  { %148 = vperm.xlu0 %302, %v134_v10   ;;  %189 = vperm.xlu2 %304, %v171_v25   ;;  %v167_v44 = vld [vmem:[%s476_s5 + $0x18] sm:$0xff]  ;;  %v166_v46 = vld [vmem:[%s476_s5 + $0x10] sm:$0xff]  ;;  %v238_v63 = vld [vmem:[%s478_s7] sm:$0x1] }
   0xc   :  { %284 = vmatmul.msk.f32.gmra.mxu0 %vm44_vm1, %v40_v7 }
   0xd   :  { %288 = vmatmul.msk.f32.gmra.mxu1 %vm90_vm2, %v35_v8 }
  0x12   :  { %174 = vperm.xlu1 %303, %v168_v14  }
  0x13   :  { %179 = vperm.xlu0 %302, %v169_v13   ;;  %184 = vperm.xlu2 %304, %v170_v38  }
  0x14   :  { %285 = vmatmul.msk.f32.gmra.mxu0 %vm44_vm1, %v41_v11 }
  0x15   :  { %289 = vmatmul.msk.f32.gmra.mxu1 %vm90_vm2, %v36_v12 }
  0x1c   :  { %286 = vmatmul.msk.f32.gmra.mxu0 %vm44_vm1, %v42_v15 }
  0x1d   :  { %290 = vmatmul.msk.f32.gmra.mxu1 %vm90_vm2, %v37_v16 }
  0x65   :  { %v190_v47 = vpop.permute.xlu2 %189 }
  0x6d   :  { %v185_v54 = vpop.permute.xlu2 %184 }
  0x74   :  { %v144_v24 = vpop.permute.xlu1 %143 }
  0x75   :  { %v154_v21 = vpop.permute.xlu0 %153 }
  0x7c   :  { %v139_v35 = vpop.permute.xlu1 %138 }
  0x7d   :  { %v149_v31 = vpop.permute.xlu0 %148 }
  0x81   :  { %v78_v17 = vpop.f32.mrf.mxu0 }
  0x82   :  { %v120_v18 = vpop.f32.mrf.mxu1 }
  0x83   :  { %v121_v32 = vadd.f32 %v120_v18, %v78_v17 }
  0x84   :  { %v175_v58 = vpop.permute.xlu1 %174 }
  0x85   :  { %v156_v39 = vadd.f32 %v139_v35, %v121_v32  ;;  %v180_v53 = vpop.permute.xlu0 %179 }
  0x87   :  { %v160_v42 = vmax.f32 %v156_v39, 0.0 }
  0x89   :  { %v81_v19 = vpop.f32.mrf.mxu0 }
  0x8a   :  { %v123_v20 = vpop.f32.mrf.mxu1 }
  0x8b   :  { %v124_v29 = vadd.f32 %v123_v20, %v81_v19 }
  0x8d   :  { %v157_v37 = vadd.f32 %v144_v24, %v124_v29 }
  0x8f   :  { %v161_v41 = vmax.f32 %v157_v37, 0.0 }
  0x91   :  { %v84_v22 = vpop.f32.mrf.mxu0 }
  0x92   :  { %v126_v23 = vpop.f32.mrf.mxu1 }
  0x93   :  { %v127_v26 = vadd.f32 %v126_v23, %v84_v22 }
  0x95   :  { %v158_v34 = vadd.f32 %v149_v31, %v127_v26 }
  0x97   :  { %v162_v40 = vmax.f32 %v158_v34, 0.0 }
  0x99   :  { %v87_v27 = vpop.f32.mrf.mxu0 }
  0x9a   :  { %v129_v28 = vpop.f32.mrf.mxu1 }
  0x9b   :  { %v130_v30 = vadd.f32 %v129_v28, %v87_v27 }
  0x9d   :  { %v159_v33 = vadd.f32 %v154_v21, %v130_v30 }
  0x9f   :  { %v163_v36 = vmax.f32 %v159_v33, 0.0 }
  0xa1   :  { %217 = vmatpush.msra.mxu2 %v163_v36  ;;  %296 = vmatpush.msra.mxu3 %v163_v36 }
  0xa3   :  { %218 = vmatpush.msra.mxu2 %v162_v40  ;;  %297 = vmatpush.msra.mxu3 %v162_v40 }
  0xa5   :  { %219 = vmatpush.msra.mxu2 %v161_v41  ;;  %298 = vmatpush.msra.mxu3 %v161_v41 }
  0xa7   :  { %220 = vmatpush.msra.mxu2 %v160_v42  ;;  %299 = vmatpush.msra.mxu3 %v160_v42 }
  0xa8   :  { %291 = vmatmul.msk.f32.vlgmr.msra.gmra.mxu2 %vm192_vm3, %v164_v43  ;;  %294 = vmatmul.msk.f32.vlgmr.msra.gmra.mxu3 %vm192_vm3, %v167_v44 }
  0xb0   :  { %292 = vmatmul.msk.f32.gmra.mxu2 %vm192_vm3, %v165_v45 }
  0xb8   :  { %293 = vmatmul.msk.f32.gmra.mxu2 %vm192_vm3, %v166_v46 }
 0x12b   :  { %v222_v48 = vpop.f32.mrf.mxu2  ;;  %v231_v49 = vpop.f32.mrf.mxu3 }
 0x12c   :  { %v232_v50 = vadd.f32 %v231_v49, %v190_v47  ;;  %v223_v59 = vadd.f32 %v222_v48, %v175_v58 }
 0x12e   :  { %v237_v51 = vmax.f32 %v232_v50, 0.0  ;;  %v234_v62 = vmax.f32 %v223_v59, 0.0 }
 0x130   :  { %256 = vmatpush.msrb.mxu3 %v237_v51 }
 0x133   :  { %v225_v52 = vpop.f32.mrf.mxu2 }
 0x134   :  { %v226_v56 = vadd.f32 %v225_v52, %v180_v53 }
 0x136   :  { %v235_v61 = vmax.f32 %v226_v56, 0.0 }
 0x13b   :  { %v228_v55 = vpop.f32.mrf.mxu2 }
 0x13c   :  { %v229_v57 = vadd.f32 %v228_v55, %v185_v54 }
 0x13e   :  { %v236_v60 = vmax.f32 %v229_v57, 0.0 }
 0x140   :  { %257 = vmatpush.msrb.mxu3 %v236_v60 }
 0x142   :  { %258 = vmatpush.msrb.mxu3 %v235_v61 }
 0x144   :  { %259 = vmatpush.msrb.mxu3 %v234_v62 }
 0x145   :  { %295 = vmatmul.msk.f32.vlgmr.msrb.gmra.mxu3 %vm192_vm3, %v238_v63 }
 0x1c8   :  { %v261_v1 = vpop.f32.mrf.mxu3 }
 0x1c9   :  { %v262_v2 = vadd.f32 %v261_v1, %v240_v0 }
 0x1cb   :  { %265 = vst.msk [vmem:[#allocation3] sm:$0x1] %vm264_vm4, %v262_v2 }
 0x1cc   :  { %276 = dma.vmem_to_hbm [thread:$0]  %s272_s28, 16, %s274_s10, [#allocation4]  }
 0x1cd   :  { %329 = dma.done.wait [#allocation4], 16  }
 0x1ce   :  { %330 = vsyncadd [#allocation4], 4294967280 }
 0x1cf   :  { %281 = vsyncpa [#allocation4], 1 }

</bundles_post_ra>
